<compile_context>
chip_gen: v6e
topology: v6e:2x2x1
jax: 0.10.0
libtpu: 0.0.40
codegen_flags: <defaults>
</compile_context>

<pallas_src>
import jax
import jax.numpy as jnp
import numpy as np
from jax.experimental import pallas as pl
from jax.experimental.pallas import tpu as pltpu

LANE = 128
MAX_BLOCK_ROWS = 1024  # (1024,128) f32 = 512 KiB per block buffer


def _hard_quant_kernel(tbl_ref, x_ref, o_ref):
    """tbl (SMEM, length 2K+1): [t_0..t_{K-1}, v_0..v_K]; x/o are (block_rows, 128) VMEM tiles.

    Select chain:
      x <= t_0                      -> v_0  (= -sum(a))
      t_{k-1} <(=) x < t_k          -> v_k  (precomputed bucket value), k = 1..K-1
      x >  t_{K-1}                  -> v_K  (= +sum(a))
    """
    x = x_ref[...]
    K = (tbl_ref.shape[0] - 1) // 2  # num_code_words - 1 (static)

    hi_val = tbl_ref[2 * K]  # +sum(a)
    if K >= 2:
        # last interior bucket: x <= t_{K-1}  (folds x == max(sorted b) into it)
        out = jnp.where(x <= tbl_ref[K - 1], tbl_ref[2 * K - 1], hi_val)
        # middle interior boundaries (strict <), from high to low
        for k in range(K - 2, 0, -1):
            out = jnp.where(x < tbl_ref[k], tbl_ref[K + k], out)
    else:
        out = jnp.zeros_like(x) + hi_val
    # low clamp: x <= b[0]  ->  -sum(a)
    out = jnp.where(x <= tbl_ref[0], tbl_ref[K], out)
    o_ref[...] = out


def _precompute_table(a, b, c):
    """Tiny K-length host/wrapper compute: thresholds + per-bucket output values."""
    a32 = a.astype(jnp.float32)
    b_raw = b.astype(jnp.float32)
    c32 = c.astype(jnp.float32)
    b_sorted = jnp.sort(b_raw)  # mirrors np.sort inside quant_in_b
    K = a32.shape[0]
    sum_a = jnp.sum(a32)

    # Midpoints of the K-1 interior buckets of sorted(b).
    mids = 0.5 * (b_sorted[:-1] + b_sorted[1:])  # (K-1,)
    # q_k = sum_i a[i] * tanh(c[i] * (mid_k - b_raw[i]))   (unsorted b, as in quant_in_b)
    q_mid = jnp.sum(
        a32[None, :] * jnp.tanh(c32[None, :] * (mids[:, None] - b_raw[None, :])),
        axis=1,
    )  # (K-1,)

    if K >= 2:
        # t_0 = b_raw[0], t_k = sorted_b[k] (k=1..K-2), t_{K-1} = b_raw[K-1]
        thresh = jnp.concatenate([b_raw[:1], b_sorted[1:K - 1], b_raw[K - 1:K]])
    else:
        thresh = b_raw[:1]
    vals = jnp.concatenate([-sum_a[None], q_mid, sum_a[None]])  # (K+1,)
    return jnp.concatenate([thresh, vals])  # (2K+1,)


def hard_quantization(x, a, b, c):
    """Pallas wrapper. x: any shape; a, b, c: shape (num_code_words - 1,)."""
    orig_shape = x.shape
    xf = x.reshape(-1).astype(jnp.float32)
    n = xf.shape[0]

    # Pad only to a lane (128) multiple; the test shape needs no padding at all.
    pad = (-n) % LANE
    if pad:
        # TODO(synk): for large inputs whose size is not a 128-multiple, this
        # whole-tensor pad copy could be replaced by a masked store on the last tile.
        xf = jnp.pad(xf, (0, pad))
    rows = xf.shape[0] // LANE
    x2 = xf.reshape(rows, LANE)

    tbl = _precompute_table(a, b, c)

    # Full-array block for small inputs (single grid step); 1024-row blocks for
    # big ones (ragged last block handled by Pallas via cdiv grid).
    block_rows = rows if rows <= MAX_BLOCK_ROWS else MAX_BLOCK_ROWS
    grid = (pl.cdiv(rows, block_rows),)

    out2 = pl.pallas_call(
        _hard_quant_kernel,
        out_shape=jax.ShapeDtypeStruct((rows, LANE), jnp.float32),
        grid=grid,
        in_specs=[
            pl.BlockSpec(memory_space=pltpu.SMEM),                # thresholds + values table
            pl.BlockSpec((block_rows, LANE), lambda i: (i, 0)),   # x tile
        ],
        out_specs=pl.BlockSpec((block_rows, LANE), lambda i: (i, 0)),
        compiler_params=pltpu.CompilerParams(dimension_semantics=("parallel",)),
    )(tbl, x2)

    return out2.reshape(-1)[:n].reshape(orig_shape)


def _reference(x, a, b, c):
    """Pure-JAX reference of the same forward semantics (float32)."""
    xf = x.reshape(-1).astype(jnp.float32)
    a = a.astype(jnp.float32)
    b = b.astype(jnp.float32)
    c = c.astype(jnp.float32)
    bs = jnp.sort(b)
    K = a.shape[0]
    sum_a = jnp.sum(a)

    xm = jnp.zeros_like(xf)
    for k in range(1, K):
        lo, hi = bs[k - 1], bs[k]
        in_bucket = (xf >= lo) & ((xf < hi) if k < K - 1 else (xf <= hi))
        xm = jnp.where(in_bucket, 0.5 * (lo + hi), xm)

    q = jnp.zeros_like(xf)
    for i in range(K):
        q = q + a[i] * jnp.tanh(c[i] * (xm - b[i]))

    out = jnp.where(xf <= b[0], -sum_a, jnp.where(xf > b[K - 1], sum_a, q))
    return out.reshape(x.shape)


if __name__ == "__main__":
    key = jax.random.PRNGKey(0)
    kx, = jax.random.split(key, 1)

    # Module parameters: num_code_words = 5 -> a, b, c each have 4 elements.
    num_code_words = 5
    K = num_code_words - 1
    # Deterministic init; b chosen already sorted (typical usage of this layer).
    a = jnp.full((K,), 0.5, dtype=jnp.float32)
    b = jnp.linspace(-1.5, 1.5, K, dtype=jnp.float32)
    c = jnp.linspace(1.0, 2.5, K, dtype=jnp.float32)

    # Input: NCHW-shaped activation tensor.
    x = jax.random.normal(kx, (2, 4, 16, 16), dtype=jnp.float32) * 2.0

    out = hard_quantization(x, a, b, c)
    out = jax.block_until_ready(out)

    ref = _reference(x, a, b, c)
    np.testing.assert_allclose(np.asarray(out), np.asarray(ref), rtol=1e-5, atol=1e-5)

    print("KERNEL_OK")
</pallas_src>

<mosaic_0001>
module attributes {stable_mosaic.version = 11 : i64} {
  func.func @_hard_quant_kernel(%arg0: i32, %arg1: memref<9xf32, #tpu.memory_space<smem>>, %arg2: memref<16x128xf32, #tpu.memory_space<vmem>>, %arg3: memref<16x128xf32, #tpu.memory_space<vmem>>) attributes {dimension_semantics = [#tpu.dimension_semantics<parallel>], iteration_bounds = array<i64: 1>, scalar_prefetch = 0 : i64, scratch_operands = 0 : i64, tpu.core_type = #tpu.core_type<tc>, window_params = [{transform_indices = @transform_0, window_bounds = array<i64: 9>}, {transform_indices = @transform_1, window_bounds = array<i64: 16, 128>}, {transform_indices = @transform_2, window_bounds = array<i64: 16, 128>}]} {
    %c0 = arith.constant 0 : index
    %c0_0 = arith.constant 0 : index
    %0 = vector.load %arg2[%c0, %c0_0] : memref<16x128xf32, #tpu.memory_space<vmem>>, vector<16x128xf32>
    %c8 = arith.constant 8 : index
    %1 = memref.load %arg1[%c8] : memref<9xf32, #tpu.memory_space<smem>>
    %c3 = arith.constant 3 : index
    %2 = memref.load %arg1[%c3] : memref<9xf32, #tpu.memory_space<smem>>
    %3 = vector.broadcast %2 : f32 to vector<16x128xf32>
    %4 = arith.cmpf ole, %0, %3 : vector<16x128xf32>
    %c7 = arith.constant 7 : index
    %5 = memref.load %arg1[%c7] : memref<9xf32, #tpu.memory_space<smem>>
    %6 = vector.broadcast %5 : f32 to vector<16x128xf32>
    %7 = vector.broadcast %1 : f32 to vector<16x128xf32>
    %8 = arith.select %4, %6, %7 : vector<16x128xi1>, vector<16x128xf32>
    %c2 = arith.constant 2 : index
    %9 = memref.load %arg1[%c2] : memref<9xf32, #tpu.memory_space<smem>>
    %10 = vector.broadcast %9 : f32 to vector<16x128xf32>
    %11 = arith.cmpf olt, %0, %10 : vector<16x128xf32>
    %c6 = arith.constant 6 : index
    %12 = memref.load %arg1[%c6] : memref<9xf32, #tpu.memory_space<smem>>
    %13 = vector.broadcast %12 : f32 to vector<16x128xf32>
    %14 = arith.select %11, %13, %8 : vector<16x128xi1>, vector<16x128xf32>
    %c1 = arith.constant 1 : index
    %15 = memref.load %arg1[%c1] : memref<9xf32, #tpu.memory_space<smem>>
    %16 = vector.broadcast %15 : f32 to vector<16x128xf32>
    %17 = arith.cmpf olt, %0, %16 : vector<16x128xf32>
    %c5 = arith.constant 5 : index
    %18 = memref.load %arg1[%c5] : memref<9xf32, #tpu.memory_space<smem>>
    %19 = vector.broadcast %18 : f32 to vector<16x128xf32>
    %20 = arith.select %17, %19, %14 : vector<16x128xi1>, vector<16x128xf32>
    %c0_1 = arith.constant 0 : index
    %21 = memref.load %arg1[%c0_1] : memref<9xf32, #tpu.memory_space<smem>>
    %22 = vector.broadcast %21 : f32 to vector<16x128xf32>
    %23 = arith.cmpf ole, %0, %22 : vector<16x128xf32>
    %c4 = arith.constant 4 : index
    %24 = memref.load %arg1[%c4] : memref<9xf32, #tpu.memory_space<smem>>
    %25 = vector.broadcast %24 : f32 to vector<16x128xf32>
    %26 = arith.select %23, %25, %20 : vector<16x128xi1>, vector<16x128xf32>
    %c0_2 = arith.constant 0 : index
    %c0_3 = arith.constant 0 : index
    %27 = vector.load %arg3[%c0_2, %c0_3] : memref<16x128xf32, #tpu.memory_space<vmem>>, vector<16x128xf32>
    tpu.vector_store %arg3[%c0_2, %c0_3], %26 {strides = array<i32>} : memref<16x128xf32, #tpu.memory_space<vmem>>, vector<16x128xf32>,
    return
  }
  func.func @transform_0(%arg0: i32) -> i32 {
    %c0_i32 = arith.constant 0 : i32
    %c0_i32_0 = arith.constant 0 : i32
    return %c0_i32 : i32
  }
  func.func @transform_1(%arg0: i32) -> (i32, i32) {
    %c0_i32 = arith.constant 0 : i32
    %c0_i32_0 = arith.constant 0 : i32
    return %arg0, %c0_i32 : i32, i32
  }
  func.func @transform_2(%arg0: i32) -> (i32, i32) {
    %c0_i32 = arith.constant 0 : i32
    %c0_i32_0 = arith.constant 0 : i32
    return %arg0, %c0_i32 : i32, i32
  }
}

</mosaic_0001>

<bundles_post_ra>
// kernel: tpu_custom_call.1
= control target key start
LH: loop header
LB: loop body
LE: loop exit
PB: predicated region body
PF: predicated region fallthrough
CT: control target
= control target key end

     0   :  { %7 = vsyncpa [#allocation5], 0  ;;  %s195_s0 = inlined_call_operand.hbm [shape: f32[9], index: 0, kind: input, shape index: {}]   ;;  %s196_s1 = inlined_call_operand.hbm [shape: f32[16,128], index: 1, kind: input, shape index: {}]   ;;  %s197_s2 = inlined_call_operand.hbm [shape: f32[16,128], index: 2, kind: output, shape index: {}]  }
   0x1   :  { %8 = vsyncpa [#allocation3], 0 }
   0x2   :  { %9 = vsyncpa [#allocation4], 0  ;;  %s160_s9 = smov [#allocation2]   ;;  %s161_s12 = smov [#allocation6]  }
   0x3   :  { %17 = dma.hbm_to_smem %s195_s0, 16, %s160_s9, [#allocation5]  }
   0x4   :  { %s23_s13 = sshll.u32 %s161_s12, 4  ;;  %s24_s13 = int_to_ptr.vmem [resolvable:$true] %s23_s13 }
   0x5   :  { %s122_s14 = scalar_lea.vmem %s24_s13, 256  ;;  %p127_p1 = scmp.lt.s32.totalorder %s24_s13, %s24_s13 }
   0x6   :  { %p123_p0 = scmp.ne.s32.totalorder %s24_s13, %s122_s14  ;;  %p128_p2 = scmp.lt.s32.totalorder %s122_s14, %s122_s14 }
   0x8   :  { %p129_p3 = por %p128_p2, %p127_p1 }
   0xa   :  { %p130_p4 = pnand %p129_p3, %p123_p0 }
   0xc   :  { %133 = shalt.err (!%p130_p4)
}
   0xd   :  { %s162_s15 = smov 128   ;;  %s163_s16 = smov 8  }
   0xe   :  { %29 = dma.hbm_to_vmem [thread:$0]  %s196_s1, 256, %s24_s13, [#allocation3], %s162_s15, %s162_s15, %s163_s16  }
   0xf   :  { %154 = dma.done.wait [#allocation5], 16  }
  0x10   :  { %155 = vsyncadd [#allocation5], 4294967280 }
  0x11   :  { %156 = dma.done.wait [#allocation3], 256  }
  0x12   :  { %157 = vsyncadd [#allocation3], 4294967040 }
  0x13   :  { %36 = sfence }
  0x14   :  { %s93_s0 = sld [smem:[#allocation2 + $0x8]]  ;;  %v37_v0 = vld [vmem:[#allocation6] sm:$0xff]  ;;  %v38_v1 = vld [vmem:[#allocation6 + $0x8] sm:$0xff]  ;;  %s164_s26 = smov [#allocation7]  }
  0x15   :  { %s94_s19 = sld [smem:[#allocation2 + $0x3]]  ;;  %s80_s27 = sshll.u32 %s164_s26, 4  ;;  %s81_s27 = int_to_ptr.vmem [resolvable:$true] %s80_s27 }
  0x16   :  { %s95_s20 = sld [smem:[#allocation2 + $0x7]]  ;;  %s134_s28 = scalar_lea.vmem %s81_s27, 256 }
  0x17   :  { %s96_s21 = sld [smem:[#allocation2 + $0x2]]  ;;  %p135_p5 = scmp.ne.s32.totalorder %s81_s27, %s134_s28 }
  0x18   :  { %s97_s22 = sld [smem:[#allocation2 + $0x6]]  ;;  %p139_p6 = scmp.lt.s32.totalorder %s81_s27, %s81_s27 }
  0x19   :  { %s98_s23 = sld [smem:[#allocation2 + $0x1]]  ;;  %p140_p7 = scmp.lt.s32.totalorder %s134_s28, %s134_s28 }
  0x1a   :  { %v46_v2 = vstv %s93_s0  ;;  %s99_s24 = sld [smem:[#allocation2 + $0x5]] }
  0x1b   :  { %v41_v3 = vstv %s94_s19  ;;  %s65_s25 = sld [smem:[#allocation2]]  ;;  %p141_p8 = por %p140_p7, %p139_p6 }
  0x1c   :  { %vm42_vm0 = vcmp.le.f32.partialorder %v37_v0, %v41_v3  ;;  %v45_v4 = vstv %s95_s20  ;;  %s100_s1 = sld [smem:[#allocation2 + $0x4]]  ;;  %vm43_vm1 = vcmp.le.f32.partialorder %v38_v1, %v41_v3 }
  0x1d   :  { %v47_v5 = vsel %vm42_vm0, %v45_v4, %v46_v2  ;;  %v50_v6 = vstv %s96_s21  ;;  %v48_v7 = vsel %vm43_vm1, %v45_v4, %v46_v2  ;;  %p142_p9 = pnand %p141_p8, %p135_p5 }
  0x1e   :  { %vm51_vm2 = vcmp.lt.f32.partialorder %v37_v0, %v50_v6  ;;  %v54_v8 = vstv %s97_s22  ;;  %vm52_vm3 = vcmp.lt.f32.partialorder %v38_v1, %v50_v6 }
  0x1f   :  { %v55_v9 = vsel %vm51_vm2, %v54_v8, %v47_v5  ;;  %v58_v10 = vstv %s98_s23  ;;  %v56_v11 = vsel %vm52_vm3, %v54_v8, %v48_v7 }
  0x20   :  { %vm59_vm4 = vcmp.lt.f32.partialorder %v37_v0, %v58_v10  ;;  %v62_v12 = vstv %s99_s24  ;;  %vm60_vm5 = vcmp.lt.f32.partialorder %v38_v1, %v58_v10 }
  0x21   :  { %v63_v13 = vsel %vm59_vm4, %v62_v12, %v55_v9  ;;  %v66_v14 = vstv %s65_s25  ;;  %v64_v15 = vsel %vm60_vm5, %v62_v12, %v56_v11 }
  0x22   :  { %vm67_vm6 = vcmp.le.f32.partialorder %v37_v0, %v66_v14  ;;  %v70_v16 = vstv %s100_s1  ;;  %vm68_vm7 = vcmp.le.f32.partialorder %v38_v1, %v66_v14 }
  0x23   :  { %v71_v17 = vsel %vm67_vm6, %v70_v16, %v63_v13  ;;  %v72_v18 = vsel %vm68_vm7, %v70_v16, %v64_v15 }
  0x24   :  { %73 = vst [vmem:[#allocation7] sm:$0xff] %v71_v17  ;;  %74 = vst [vmem:[#allocation7 + $0x8] sm:$0xff] %v72_v18 }
  0x25   :  { %145 = shalt.err (!%p142_p9)
}
  0x26   :  { %86 = dma.vmem_to_hbm [thread:$0]  %s81_s27, 256, %s197_s2, [#allocation4], %s162_s15, %s162_s15, %s163_s16  }
  0x27   :  { %158 = dma.done.wait [#allocation4], 256  }
  0x28   :  { %159 = vsyncadd [#allocation4], 4294967040 }
  0x29   :  { %90 = vsyncpa [#allocation3], 1 }
  0x2a   :  { %91 = vsyncpa [#allocation4], 1 }
  0x2b   :  { %92 = vsyncpa [#allocation5], 1 }

</bundles_post_ra>
